<compile_context>
chip_gen: v7x
topology: tpu7x:2x2x1
jax: 0.10.0
libtpu: 0.0.40
codegen_flags: <defaults>
</compile_context>

<pallas_src>
import functools

import jax
import jax.numpy as jnp
from jax.experimental import pallas as pl
from jax.experimental.pallas import tpu as pltpu


def _round_up(x, m):
    return ((x + m - 1) // m) * m


def _padded_item_axis(item_num, cap=2048):
    """Pick a large item tile (multiple of 128, <= cap) and pad the item axis
    up to a multiple of it (at most one tile of wasted weight streaming)."""
    in_128 = _round_up(item_num, 128)
    tile = min(in_128, cap)
    return tile, _round_up(in_128, tile)


# ------------------------- fused Pallas kernel ------------------------------


def _make_fused_kernel(filter_sizes, num_filters, hidden_size, final_dim):
    F = num_filters
    n_fs = len(filter_sizes)
    NG = n_fs * F                      # channels per tap group
    max_fs = max(filter_sizes)

    def kernel(emb_ref, tapw_ref, bm_ref, vw_ref, vb_ref, w_ref, b_ref,
               sup_ref, sh_out_ref, sh_ref):
        # ---------------- encoder: only on the first grid step --------------
        @pl.when(pl.program_id(0) == 0)
        def _():
            emb = emb_ref[...]                              # [B, S, H] bf16
            B, S, H = emb.shape

            # All conv taps of all filter sizes in ONE MXU matmul.
            taps = jnp.dot(emb.reshape(B * S, H), tapw_ref[...],
                           preferred_element_type=jnp.float32)  # [B*S, CW]

            # Shifted adds: tap groups are laid out by tap index r, so r-th
            # group needs the r-rows-later activations (sublane roll; the
            # wrapped / cross-batch rows all land in time positions that the
            # bias+mask kills before the max-pool).
            acc = taps[:, 0:NG]
            for r in range(1, max_fs):
                rolled = pltpu.roll(taps, shift=B * S - r, axis=0)
                acc = acc + rolled[:, r * NG:(r + 1) * NG]
            acc = acc.reshape(B, S, NG)

            # bias + (-1e9) time-validity mask, ReLU, max-pool over time.
            h = jnp.maximum(acc + bm_ref[...][None, :, :], 0.0)
            pooled = jnp.max(h, axis=1)                     # [B, NG]

            # Vertical conv: weighted sum over the seq axis + ReLU.
            emb_f = emb.astype(jnp.float32)
            v = jnp.maximum(
                jnp.sum(emb_f * vw_ref[...][None, :, :], axis=1) + vb_ref[...],
                0.0)                                        # [B, H]

            # Build state_hidden in registers, store once (lane-dense).
            fd_pad = sh_ref.shape[1]
            parts = [pooled, v]
            if fd_pad > final_dim:
                parts.append(jnp.zeros((B, fd_pad - final_dim), jnp.float32))
            sh = jnp.concatenate(parts, axis=1)             # [B, fd_pad]
            sh_out_ref[...] = sh
            sh_ref[...] = sh.astype(jnp.bfloat16)           # matmul operand

        # ---------------- supervised head: one item tile per step -----------
        sup_ref[...] = (jnp.dot(sh_ref[...], w_ref[...],
                                preferred_element_type=jnp.float32)
                        + b_ref[...])

    return kernel


# ------------------------- kernel wrapper -----------------------------------


def caser_encoder_and_sup_head(emb_bf16, prep, *, hidden_size, item_num,
                               num_filters, filter_sizes):
    """Fused Caser encoder + supervised head.  Returns (sup_logits [B, I],
    state_hidden [B, final_dim] f32)."""
    B, S, H = emb_bf16.shape
    F = num_filters
    n_fs = len(filter_sizes)
    NG = n_fs * F
    final_dim = hidden_size + NG
    fd_pad = _round_up(final_dim, 128)
    tile_n, in_pad = _padded_item_axis(item_num)
    n_tiles = in_pad // tile_n
    CW = prep['tap_w'].shape[1]

    kernel = _make_fused_kernel(tuple(filter_sizes), F, hidden_size, final_dim)

    # Deeper buffering on the streamed weight only pays off for long item axes.
    if n_tiles > 2:
        w_spec = pl.BlockSpec((fd_pad, tile_n), lambda n: (0, n),
                              pipeline_mode=pl.Buffered(3))
    else:
        w_spec = pl.BlockSpec((fd_pad, tile_n), lambda n: (0, n))

    grid_spec = pltpu.PrefetchScalarGridSpec(
        num_scalar_prefetch=0,
        grid=(n_tiles,),
        in_specs=[
            pl.BlockSpec((B, S, H), lambda n: (0, 0, 0)),   # emb (resident)
            pl.BlockSpec((H, CW), lambda n: (0, 0)),        # fused tap weights
            pl.BlockSpec((S, NG), lambda n: (0, 0)),        # bias + time mask
            pl.BlockSpec((S, 1), lambda n: (0, 0)),         # vertical conv W
            pl.BlockSpec((1, 1), lambda n: (0, 0)),         # vertical conv b
            w_spec,                                         # streamed sup W
            pl.BlockSpec((1, tile_n), lambda n: (0, n)),    # streamed sup b
        ],
        out_specs=(
            pl.BlockSpec((B, tile_n), lambda n: (0, n)),    # sup logits tile
            pl.BlockSpec((B, fd_pad), lambda n: (0, 0)),    # state_hidden
        ),
        scratch_shapes=[pltpu.VMEM((B, fd_pad), jnp.bfloat16)],
    )
    sup_pad, sh_pad = pl.pallas_call(
        kernel,
        out_shape=(jax.ShapeDtypeStruct((B, in_pad), jnp.float32),
                   jax.ShapeDtypeStruct((B, fd_pad), jnp.float32)),
        grid_spec=grid_spec,
        compiler_params=pltpu.CompilerParams(
            # "arbitrary": later item tiles consume the step-0 encoder scratch,
            # so the grid must run sequentially on one core.
            dimension_semantics=("arbitrary",),
            vmem_limit_bytes=32 * 1024 * 1024),
    )(emb_bf16, prep['tap_w'], prep['bm'], prep['vw'], prep['vb'],
      prep['w_sup'], prep['b_sup'])
    # Padded item columns are exact zeros; slice them off BEFORE any argmax.
    return sup_pad[:, :item_num], sh_pad[:, :final_dim]


# ------------------------- one-time parameter packing -----------------------


def prepare_params(params, *, hidden_size, item_num, state_size, num_filters,
                   filter_sizes):
    """One-time packing of weights into kernel-friendly, padded, pre-cast
    layouts.  Runs OUTSIDE the jitted step, so none of this pad/cast HBM
    traffic is paid per forward."""
    F = num_filters
    n_fs = len(filter_sizes)
    NG = n_fs * F
    max_fs = max(filter_sizes)
    H = hidden_size
    S = state_size
    final_dim = H + NG
    fd_pad = _round_up(final_dim, 128)
    CW = _round_up(max_fs * NG, 128)

    # Horizontal-conv taps grouped by tap index r (all filter sizes' F
    # channels per r); filters shorter than r get zero columns.
    tap_w = jnp.zeros((H, CW), jnp.float32)
    for i, fs in enumerate(filter_sizes):
        w_i, _ = params['hconvs'][i]                        # [fs, H, F]
        for r in range(fs):
            c0 = r * NG + i * F
            tap_w = tap_w.at[:, c0:c0 + F].set(w_i[r])

    # Per-time bias + validity mask: -1e9 at time rows beyond each filter's
    # valid conv range (=> 0 after ReLU, never selected by the max-pool).
    rows = []
    for t in range(S):
        cols = []
        for i, fs in enumerate(filter_sizes):
            b_i = params['hconvs'][i][1][0]                 # [F]
            if t <= S - fs:
                cols.append(b_i)
            else:
                cols.append(jnp.full((F,), -1e9, jnp.float32))
        rows.append(jnp.concatenate(cols))
    bm = jnp.stack(rows)                                    # [S, NG]

    # Supervised-head weight/bias, padded to the item-tile grid, pre-cast.
    _, in_pad = _padded_item_axis(item_num)
    w_sup, b_sup = params['s_fc']
    w_sup_pad = jnp.pad(w_sup, ((0, fd_pad - final_dim), (0, in_pad - item_num)))
    b_sup_pad = jnp.pad(b_sup, ((0, 0), (0, in_pad - item_num)))

    return {
        'tap_w': tap_w.astype(jnp.bfloat16),   # [H, CW] bf16
        'bm': bm,                              # [S, NG] f32
        'vw': params['vw'],                    # [S, 1]  f32
        'vb': params['vb'],                    # [1, 1]  f32
        'w_sup': w_sup_pad.astype(jnp.bfloat16),   # [fd_pad, in_pad] bf16
        'b_sup': b_sup_pad,                        # [1, in_pad] f32
    }


# ------------------------- full forward (glue + kernel) ---------------------


def caser_smorl_forward(params, prep, states, len_states, actions, acc_rewards,
                        target_Qs, target_Qs_s, is_done, *,
                        hidden_size, item_num, num_filters, filter_sizes,
                        discount, smorl_loss_mult, smorl_weights):
    B = states.shape[0]
    w = jnp.asarray(smorl_weights, jnp.float32)

    # embedding lookup + padding mask (glue: gather)
    emb = params['item_emb'][states]                                # [B, S, H]
    mask = (states != item_num).astype(jnp.float32)[..., None]
    emb = (emb * mask).astype(jnp.bfloat16)
    # TODO(synk): nn.Dropout on state_hidden treated as identity (eval mode).

    sup, state_hidden = caser_encoder_and_sup_head(
        emb, prep, hidden_size=hidden_size, item_num=item_num,
        num_filters=num_filters, filter_sizes=filter_sizes)
    sup_preds = jnp.argmax(sup, axis=-1)                            # [B]

    # RL heads are only consumed at the `actions` column: gather B weight
    # columns per head and do a tiny dot (no [3, FD, item_num] stack, no full
    # RL-head logits).
    def head_q(wb):
        wt, bt = wb
        return jnp.einsum('bf,fb->b', state_hidden, wt[:, actions]) + bt[0, actions]
    smorl_q_values = jnp.stack([head_q(params['acc_fc']),
                                head_q(params['div_fc']),
                                head_q(params['nov_fc'])], axis=1)  # [B, 3]

    batch_ix = jnp.arange(B)
    # zero-out target_Qs of finished episodes (replaces in-place mutation)
    target_Qs = jnp.where(is_done[:, None, None], 0.0, target_Qs)
    tqs = (target_Qs_s[:, 0, :] * w[0] + target_Qs_s[:, 1, :] * w[1]
           + target_Qs_s[:, 2, :] * w[2])                           # [B, I]
    max_actions = jnp.argmax(tqs, axis=-1)                          # [B]
    next_q = target_Qs[batch_ix, :, max_actions]                    # [B, 3]

    # diversity rewards: 1 - cosine(last click emb, top pred emb)
    last_click = states[batch_ix, len_states - 1]
    e1 = params['div_emb'][last_click]
    e2 = params['div_emb'][sup_preds]
    n1 = jnp.sqrt(jnp.sum(e1 * e1, axis=-1))
    n2 = jnp.sqrt(jnp.sum(e2 * e2, axis=-1))
    cos = jnp.sum(e1 * e2, axis=-1) / jnp.maximum(n1 * n2, 1e-6)
    div_rewards = 1.0 - cos

    # novelty rewards: dict lookup replaced by dense table indexed by preds
    nov_rewards = params['nov_table'][sup_preds]

    rewards = jnp.stack([acc_rewards, div_rewards, nov_rewards], axis=0).T
    targets = rewards + discount * next_q                           # [B, 3]

    # weighted 0.5*MSE over objectives, mean over batch (plain JAX; tiny op)
    diff = jax.lax.stop_gradient(targets) - smorl_q_values
    l = 0.5 * diff * diff
    loss = jnp.mean(l[:, 0] * w[0] + l[:, 1] * w[1] + l[:, 2] * w[2])
    return sup, loss * smorl_loss_mult


# ------------------------- deterministic params -----------------------------


def init_params(key, hidden_size, item_num, state_size, num_filters, filter_sizes):
    ks = jax.random.split(key, 16)
    final_dim = hidden_size + num_filters * len(filter_sizes)
    params = {}
    params['item_emb'] = 0.01 * jax.random.normal(
        ks[0], (item_num + 1, hidden_size), jnp.float32)

    hconvs = []
    for i, fs in enumerate(filter_sizes):
        fan_in = fs * hidden_size
        fan_out = num_filters * fs * hidden_size
        std = (2.0 / (fan_in + fan_out)) ** 0.5
        wc = std * jax.random.normal(ks[1 + i], (fs, hidden_size, num_filters),
                                     jnp.float32)
        bc = jnp.full((1, num_filters), 0.1, jnp.float32)
        hconvs.append((wc, bc))
    params['hconvs'] = hconvs

    vstd = (2.0 / (2.0 * state_size)) ** 0.5
    params['vw'] = vstd * jax.random.normal(ks[5], (state_size, 1), jnp.float32)
    params['vb'] = jnp.full((1, 1), 0.1, jnp.float32)

    def linear(k, din, dout):
        kw, kb = jax.random.split(k)
        bound = 1.0 / (din ** 0.5)
        wl = jax.random.uniform(kw, (din, dout), jnp.float32, -bound, bound)
        bl = jax.random.uniform(kb, (1, dout), jnp.float32, -bound, bound)
        return (wl, bl)

    params['s_fc'] = linear(ks[6], final_dim, item_num)
    params['acc_fc'] = linear(ks[7], final_dim, item_num)
    params['div_fc'] = linear(ks[8], final_dim, item_num)
    params['nov_fc'] = linear(ks[9], final_dim, item_num)

    params['div_emb'] = 0.01 * jax.random.normal(
        ks[10], (item_num + 1, hidden_size), jnp.float32)
    params['nov_table'] = jax.random.uniform(ks[11], (item_num,), jnp.float32)
    return params


# ------------------------- demo ---------------------------------------------


if __name__ == "__main__":
    hidden_size = 32
    item_num = 300          # padded to 384 -> single 384-wide item tile
    state_size = 8
    num_filters = 8
    filter_sizes = (2, 3, 4)
    discount = 0.5
    smorl_loss_mult = 1.0
    smorl_weights = (1.0, 0.5, 0.5)
    B = 8

    key = jax.random.PRNGKey(0)
    kp, kd = jax.random.split(key)
    params = init_params(kp, hidden_size, item_num, state_size, num_filters,
                         filter_sizes)
    # One-time packing of padded / bf16 weights (outside the jitted step).
    prep = prepare_params(params, hidden_size=hidden_size, item_num=item_num,
                          state_size=state_size, num_filters=num_filters,
                          filter_sizes=filter_sizes)

    ks = jax.random.split(kd, 8)
    states = jax.random.randint(ks[0], (B, state_size), 0, item_num + 1,
                                dtype=jnp.int32)          # item_num = padding id
    len_states = jax.random.randint(ks[1], (B,), 1, state_size + 1,
                                    dtype=jnp.int32)
    actions = jax.random.randint(ks[2], (B,), 0, item_num, dtype=jnp.int32)
    acc_rewards = jax.random.uniform(ks[3], (B,), jnp.float32)
    target_Qs = jax.random.normal(ks[4], (B, 3, item_num), jnp.float32)
    target_Qs_s = jax.random.normal(ks[5], (B, 3, item_num), jnp.float32)
    is_done = jax.random.bernoulli(ks[6], 0.3, (B,))

    fwd = jax.jit(functools.partial(
        caser_smorl_forward,
        hidden_size=hidden_size, item_num=item_num, num_filters=num_filters,
        filter_sizes=filter_sizes, discount=discount,
        smorl_loss_mult=smorl_loss_mult, smorl_weights=smorl_weights))

    supervised_output, loss = fwd(params, prep, states, len_states, actions,
                                  acc_rewards, target_Qs, target_Qs_s, is_done)
    jax.block_until_ready((supervised_output, loss))
    assert supervised_output.shape == (B, item_num)
    assert loss.shape == ()
    assert bool(jnp.isfinite(loss))
    print("KERNEL_OK")
</pallas_src>

<mosaic_0001>
module attributes {stable_mosaic.version = 11 : i64} {
  func.func @kernel(%arg0: i32, %arg1: memref<8x8x32xbf16, #tpu.memory_space<vmem>>, %arg2: memref<32x128xbf16, #tpu.memory_space<vmem>>, %arg3: memref<8x24xf32, #tpu.memory_space<vmem>>, %arg4: memref<8x1xf32, #tpu.memory_space<vmem>>, %arg5: memref<1x1xf32, #tpu.memory_space<vmem>>, %arg6: memref<128x384xbf16, #tpu.memory_space<vmem>>, %arg7: memref<1x384xf32, #tpu.memory_space<vmem>>, %arg8: memref<8x384xf32, #tpu.memory_space<vmem>>, %arg9: memref<8x128xf32, #tpu.memory_space<vmem>>, %arg10: memref<8x128xbf16, #tpu.memory_space<vmem>>) attributes {dimension_semantics = [#tpu.dimension_semantics<arbitrary>], iteration_bounds = array<i64: 1>, scalar_prefetch = 0 : i64, scratch_operands = 1 : i64, tpu.core_type = #tpu.core_type<tc>, window_params = [{pipeline_mode = #tpu.pipeline_mode<synchronous>, transform_indices = @transform_0, window_bounds = array<i64: 8, 8, 32>}, {pipeline_mode = #tpu.pipeline_mode<synchronous>, transform_indices = @transform_1, window_bounds = array<i64: 32, 128>}, {pipeline_mode = #tpu.pipeline_mode<synchronous>, transform_indices = @transform_2, window_bounds = array<i64: 8, 24>}, {pipeline_mode = #tpu.pipeline_mode<synchronous>, transform_indices = @transform_3, window_bounds = array<i64: 8, 1>}, {pipeline_mode = #tpu.pipeline_mode<synchronous>, transform_indices = @transform_4, window_bounds = array<i64: 1, 1>}, {transform_indices = @transform_5, window_bounds = array<i64: 128, 384>}, {transform_indices = @transform_6, window_bounds = array<i64: 1, 384>}, {transform_indices = @transform_7, window_bounds = array<i64: 8, 384>}, {pipeline_mode = #tpu.pipeline_mode<synchronous>, transform_indices = @transform_8, window_bounds = array<i64: 8, 128>}]} {
    %c0_i32 = arith.constant 0 : i32
    %0 = arith.cmpi eq, %arg0, %c0_i32 : i32
    %1 = arith.extui %0 : i1 to i32
    %c0_i32_0 = arith.constant 0 : i32
    %2 = arith.cmpi ne, %1, %c0_i32_0 : i32
    scf.if %2 {
      %c0_8 = arith.constant 0 : index
      %c0_9 = arith.constant 0 : index
      %c0_10 = arith.constant 0 : index
      %10 = vector.load %arg1[%c0_8, %c0_9, %c0_10] : memref<8x8x32xbf16, #tpu.memory_space<vmem>>, vector<8x8x32xbf16>
      %11 = vector.shape_cast %10 : vector<8x8x32xbf16> to vector<64x32xbf16>
      %c0_11 = arith.constant 0 : index
      %c0_12 = arith.constant 0 : index
      %12 = vector.load %arg2[%c0_11, %c0_12] : memref<32x128xbf16, #tpu.memory_space<vmem>>, vector<32x128xbf16>
      %cst_13 = arith.constant dense<0.000000e+00> : vector<64x128xf32>
      %13 = tpu.matmul %11, %12, %cst_13 {dimension_numbers = #tpu.dot_dimension_numbers<[1], [0], [0], [1], [0, 0, 1, 1], [], []>} : vector<64x32xbf16>, vector<32x128xbf16>, vector<64x128xf32> -> vector<64x128xf32>
      %14 = vector.extract_strided_slice %13 {offsets = [0, 0], sizes = [64, 24], strides = [1, 1]} : vector<64x128xf32> to vector<64x24xf32>
      %c63_i32 = arith.constant 63 : i32
      %15 = tpu.dynamic_rotate %13 by %c63_i32 dim 0 : vector<64x128xf32>, i32 -> vector<64x128xf32>
      %16 = vector.extract_strided_slice %15 {offsets = [0, 24], sizes = [64, 24], strides = [1, 1]} : vector<64x128xf32> to vector<64x24xf32>
      %17 = arith.addf %14, %16 : vector<64x24xf32>
      %c62_i32 = arith.constant 62 : i32
      %18 = tpu.dynamic_rotate %13 by %c62_i32 dim 0 : vector<64x128xf32>, i32 -> vector<64x128xf32>
      %19 = vector.extract_strided_slice %18 {offsets = [0, 48], sizes = [64, 24], strides = [1, 1]} : vector<64x128xf32> to vector<64x24xf32>
      %20 = arith.addf %17, %19 : vector<64x24xf32>
      %c61_i32 = arith.constant 61 : i32
      %21 = tpu.dynamic_rotate %13 by %c61_i32 dim 0 : vector<64x128xf32>, i32 -> vector<64x128xf32>
      %22 = vector.extract_strided_slice %21 {offsets = [0, 72], sizes = [64, 24], strides = [1, 1]} : vector<64x128xf32> to vector<64x24xf32>
      %23 = arith.addf %20, %22 : vector<64x24xf32>
      %24 = vector.shape_cast %23 : vector<64x24xf32> to vector<8x8x24xf32>
      %c0_14 = arith.constant 0 : index
      %c0_15 = arith.constant 0 : index
      %25 = vector.load %arg3[%c0_14, %c0_15] : memref<8x24xf32, #tpu.memory_space<vmem>>, vector<8x24xf32>
      %26 = vector.shape_cast %25 : vector<8x24xf32> to vector<1x8x24xf32>
      %27 = vector.broadcast %26 : vector<1x8x24xf32> to vector<8x8x24xf32>
      %28 = arith.addf %24, %27 : vector<8x8x24xf32>
      %cst_16 = arith.constant 0.000000e+00 : f32
      %29 = vector.broadcast %cst_16 : f32 to vector<8x8x24xf32>
      %30 = arith.maximumf %28, %29 : vector<8x8x24xf32>
      %cst_17 = arith.constant dense<0xFF800000> : vector<8x24xf32>
      %31 = vector.multi_reduction <maximumf>, %30, %cst_17 [1] : vector<8x8x24xf32> to vector<8x24xf32>
      %32 = arith.extf %10 : vector<8x8x32xbf16> to vector<8x8x32xf32>
      %c0_18 = arith.constant 0 : index
      %c0_19 = arith.constant 0 : index
      %33 = vector.load %arg4[%c0_18, %c0_19] : memref<8x1xf32, #tpu.memory_space<vmem>>, vector<8x1xf32>
      %34 = vector.shape_cast %33 : vector<8x1xf32> to vector<1x8x1xf32>
      %35 = vector.broadcast %34 : vector<1x8x1xf32> to vector<8x8x32xf32>
      %36 = arith.mulf %32, %35 : vector<8x8x32xf32>
      %cst_20 = arith.constant dense<0.000000e+00> : vector<8x32xf32>
      %37 = vector.multi_reduction <add>, %36, %cst_20 [1] : vector<8x8x32xf32> to vector<8x32xf32>
      %c0_21 = arith.constant 0 : index
      %c0_22 = arith.constant 0 : index
      %38 = vector.load %arg5[%c0_21, %c0_22] : memref<1x1xf32, #tpu.memory_space<vmem>>, vector<1x1xf32>
      %39 = vector.broadcast %38 : vector<1x1xf32> to vector<8x32xf32>
      %40 = arith.addf %37, %39 : vector<8x32xf32>
      %cst_23 = arith.constant 0.000000e+00 : f32
      %41 = vector.broadcast %cst_23 : f32 to vector<8x32xf32>
      %42 = arith.maximumf %40, %41 : vector<8x32xf32>
      %cst_24 = arith.constant 0.000000e+00 : f32
      %43 = vector.broadcast %cst_24 : f32 to vector<8x72xf32>
      %44 = tpu.concatenate %31, %42, %43 in 1 : vector<8x24xf32>, vector<8x32xf32>, vector<8x72xf32> -> vector<8x128xf32>
      %c0_25 = arith.constant 0 : index
      %c0_26 = arith.constant 0 : index
      %45 = vector.load %arg9[%c0_25, %c0_26] : memref<8x128xf32, #tpu.memory_space<vmem>>, vector<8x128xf32>
      tpu.vector_store %arg9[%c0_25, %c0_26], %44 {strides = array<i32>} : memref<8x128xf32, #tpu.memory_space<vmem>>, vector<8x128xf32>,
      %46 = arith.truncf %44 : vector<8x128xf32> to vector<8x128xbf16>
      %c0_27 = arith.constant 0 : index
      %c0_28 = arith.constant 0 : index
      %47 = vector.load %arg10[%c0_27, %c0_28] : memref<8x128xbf16, #tpu.memory_space<vmem>>, vector<8x128xbf16>
      tpu.vector_store %arg10[%c0_27, %c0_28], %46 {strides = array<i32>} : memref<8x128xbf16, #tpu.memory_space<vmem>>, vector<8x128xbf16>,
    } else {
    }
    %c0 = arith.constant 0 : index
    %c0_1 = arith.constant 0 : index
    %3 = vector.load %arg10[%c0, %c0_1] : memref<8x128xbf16, #tpu.memory_space<vmem>>, vector<8x128xbf16>
    %c0_2 = arith.constant 0 : index
    %c0_3 = arith.constant 0 : index
    %4 = vector.load %arg6[%c0_2, %c0_3] : memref<128x384xbf16, #tpu.memory_space<vmem>>, vector<128x384xbf16>
    %cst = arith.constant dense<0.000000e+00> : vector<8x384xf32>
    %5 = tpu.matmul %3, %4, %cst {dimension_numbers = #tpu.dot_dimension_numbers<[1], [0], [0], [1], [0, 0, 1, 1], [], []>} : vector<8x128xbf16>, vector<128x384xbf16>, vector<8x384xf32> -> vector<8x384xf32>
    %c0_4 = arith.constant 0 : index
    %c0_5 = arith.constant 0 : index
    %6 = vector.load %arg7[%c0_4, %c0_5] : memref<1x384xf32, #tpu.memory_space<vmem>>, vector<1x384xf32>
    %7 = vector.broadcast %6 : vector<1x384xf32> to vector<8x384xf32>
    %8 = arith.addf %5, %7 : vector<8x384xf32>
    %c0_6 = arith.constant 0 : index
    %c0_7 = arith.constant 0 : index
    %9 = vector.load %arg8[%c0_6, %c0_7] : memref<8x384xf32, #tpu.memory_space<vmem>>, vector<8x384xf32>
    tpu.vector_store %arg8[%c0_6, %c0_7], %8 {strides = array<i32>} : memref<8x384xf32, #tpu.memory_space<vmem>>, vector<8x384xf32>,
    return
  }
  func.func @transform_0(%arg0: i32) -> (i32, i32, i32) {
    %c0_i32 = arith.constant 0 : i32
    %c0_i32_0 = arith.constant 0 : i32
    %c0_i32_1 = arith.constant 0 : i32
    %c0_i32_2 = arith.constant 0 : i32
    return %c0_i32, %c0_i32_0, %c0_i32_1 : i32, i32, i32
  }
  func.func @transform_1(%arg0: i32) -> (i32, i32) {
    %c0_i32 = arith.constant 0 : i32
    %c0_i32_0 = arith.constant 0 : i32
    %c0_i32_1 = arith.constant 0 : i32
    return %c0_i32, %c0_i32_0 : i32, i32
  }
  func.func @transform_2(%arg0: i32) -> (i32, i32) {
    %c0_i32 = arith.constant 0 : i32
    %c0_i32_0 = arith.constant 0 : i32
    %c0_i32_1 = arith.constant 0 : i32
    return %c0_i32, %c0_i32_0 : i32, i32
  }
  func.func @transform_3(%arg0: i32) -> (i32, i32) {
    %c0_i32 = arith.constant 0 : i32
    %c0_i32_0 = arith.constant 0 : i32
    %c0_i32_1 = arith.constant 0 : i32
    return %c0_i32, %c0_i32_0 : i32, i32
  }
  func.func @transform_4(%arg0: i32) -> (i32, i32) {
    %c0_i32 = arith.constant 0 : i32
    %c0_i32_0 = arith.constant 0 : i32
    %c0_i32_1 = arith.constant 0 : i32
    return %c0_i32, %c0_i32_0 : i32, i32
  }
  func.func @transform_5(%arg0: i32) -> (i32, i32) {
    %c0_i32 = arith.constant 0 : i32
    %c0_i32_0 = arith.constant 0 : i32
    return %c0_i32, %arg0 : i32, i32
  }
  func.func @transform_6(%arg0: i32) -> (i32, i32) {
    %c0_i32 = arith.constant 0 : i32
    %c0_i32_0 = arith.constant 0 : i32
    return %c0_i32, %arg0 : i32, i32
  }
  func.func @transform_7(%arg0: i32) -> (i32, i32) {
    %c0_i32 = arith.constant 0 : i32
    %c0_i32_0 = arith.constant 0 : i32
    return %c0_i32, %arg0 : i32, i32
  }
  func.func @transform_8(%arg0: i32) -> (i32, i32) {
    %c0_i32 = arith.constant 0 : i32
    %c0_i32_0 = arith.constant 0 : i32
    %c0_i32_1 = arith.constant 0 : i32
    return %c0_i32, %c0_i32_0 : i32, i32
  }
}

</mosaic_0001>

<bundles_post_ra>
// kernel: caser_smorl_forward.1
= control target key start
LH: loop header
LB: loop body
LE: loop exit
PB: predicated region body
PF: predicated region fallthrough
CT: control target
= control target key end

     0   :  { %s1434_s0 = inlined_call_operand.vmem [shape: bf16[8,8,32], index: 0, kind: input, shape index: {}]   ;;  %s1435_s1 = inlined_call_operand.hbm [shape: bf16[32,128], index: 1, kind: input, shape index: {}]   ;;  %s1436_s2 = inlined_call_operand.hbm [shape: f32[8,24], index: 2, kind: input, shape index: {}]   ;;  %s1437_s3 = inlined_call_operand.vmem [shape: f32[8,1], index: 3, kind: input, shape index: {}]   ;;  %s1438_s4 = inlined_call_operand.<no memory space> [shape: f32[1,1], index: 4, kind: input, shape index: {}]   ;;  %s1439_s5 = inlined_call_operand.hbm [shape: bf16[128,384], index: 5, kind: input, shape index: {}]   ;;  %s1440_s6 = inlined_call_operand.hbm [shape: f32[1,384], index: 6, kind: input, shape index: {}]   ;;  %s1441_s7 = inlined_call_operand.vmem [shape: f32[8,384], index: 7, kind: output, shape index: {0}]   ;;  %s1442_s8 = inlined_call_operand.vmem [shape: f32[8,128], index: 8, kind: output, shape index: {1}]  }
   0x1   :  { %v14_v0 = vstv %s1438_s4 }
   0x2   :  { %15 = vst [vmem:[#allocation3] sm:$0x1] %v14_v0 }
   0x3   :  { %16 = vsyncpa [#allocation5], 0 }
   0x4   :  { %17 = vsyncpa [#allocation7], 0 }
   0x5   :  { %18 = vsyncpa [#allocation10], 0  ;;  %s1113_s29 = smov [#allocation6]   ;;  %s1114_s9 = smov [#allocation4]  }
   0x6   :  { %s39_s30 = sshll.u32 %s1113_s29, 4  ;;  %s26_s10 = sshll.u32 %s1114_s9, 4  ;;  %s40_s30 = int_to_ptr.vmem [resolvable:$true] %s39_s30  ;;  %s1176_s10 = int_to_ptr.vmem [resolvable:$true] %s26_s10 }
   0x7   :  { %s1019_s13 = scalar_lea.hbm %s1436_s2, 128 }
   0x8   :  { %p1020_p0 = scmp.ne.s32.totalorder %s1436_s2, %s1019_s13  ;;  %p1023_p1 = scmp.lt.u32.totalorder %s1019_s13, %s1436_s2 }
   0xa   :  { %p1025_p2 = pnand %p1023_p1, %p1020_p0 }
   0xc   :  { %1028 = shalt.err (!%p1025_p2)
}
   0xd   :  { %s1029_s17 = scalar_lea.vmem %s40_s30, 128  ;;  %p1034_p4 = scmp.lt.s32.totalorder %s40_s30, %s40_s30 }
   0xe   :  { %p1030_p3 = scmp.ne.s32.totalorder %s40_s30, %s1029_s17  ;;  %p1035_p5 = scmp.lt.s32.totalorder %s1029_s17, %s1029_s17 }
  0x10   :  { %p1036_p6 = por %p1035_p5, %p1034_p4 }
  0x12   :  { %p1037_p7 = pnand %p1036_p6, %p1030_p3 }
  0x14   :  { %1040 = shalt.err (!%p1037_p7)
}
  0x15   :  { %42 = dma.hbm_to_vmem [thread:$0]  %s1436_s2, 128, %s40_s30, [#allocation7]  }
  0x16   :  { %s1041_s22 = scalar_lea.hbm %s1435_s1, 256 }
  0x17   :  { %p1042_p8 = scmp.ne.s32.totalorder %s1435_s1, %s1041_s22  ;;  %p1045_p9 = scmp.lt.u32.totalorder %s1041_s22, %s1435_s1 }
  0x19   :  { %p1047_p10 = pnand %p1045_p9, %p1042_p8 }
  0x1b   :  { %1050 = shalt.err (!%p1047_p10)
}
  0x1c   :  { %s1051_s27 = scalar_lea.vmem %s1176_s10, 256  ;;  %p1056_p12 = scmp.lt.s32.totalorder %s1176_s10, %s1176_s10 }
  0x1d   :  { %p1052_p11 = scmp.ne.s32.totalorder %s1176_s10, %s1051_s27  ;;  %p1057_p13 = scmp.lt.s32.totalorder %s1051_s27, %s1051_s27 }
  0x1f   :  { %p1058_p0 = por %p1057_p13, %p1056_p12 }
  0x21   :  { %p1059_p1 = pnand %p1058_p0, %p1052_p11 }
  0x23   :  { %1062 = shalt.err (!%p1059_p1)
}
  0x24   :  { %s1115_s2 = smov 64   ;;  %s1116_s28 = smov 4  }
  0x25   :  { %32 = dma.hbm_to_vmem [thread:$0]  %s1435_s1, 256, %s1176_s10, [#allocation5], %s1115_s2, %s1115_s2, %s1116_s28  }
  0x26   :  { %s1117_s9 = smov [#allocation8]   ;;  %s1063_s14 = scalar_lea.hbm %s1439_s5, 3072 }
  0x27   :  { %s52_s11 = sshll.u32 %s1117_s9, 4  ;;  %p1064_p2 = scmp.ne.s32.totalorder %s1439_s5, %s1063_s14  ;;  %s53_s11 = int_to_ptr.vmem [resolvable:$true] %s52_s11 }
  0x28   :  { %p1067_p3 = scmp.lt.u32.totalorder %s1063_s14, %s1439_s5 }
  0x2a   :  { %p1069_p4 = pnand %p1067_p3, %p1064_p2 }
  0x2c   :  { %1072 = shalt.err (!%p1069_p4)
}
  0x2d   :  { %s1073_s18 = scalar_lea.vmem %s53_s11, 3072  ;;  %p1078_p6 = scmp.lt.s32.totalorder %s53_s11, %s53_s11 }
  0x2e   :  { %p1074_p5 = scmp.ne.s32.totalorder %s53_s11, %s1073_s18  ;;  %p1079_p7 = scmp.lt.s32.totalorder %s1073_s18, %s1073_s18 }
  0x30   :  { %p1080_p8 = por %p1079_p7, %p1078_p6 }
  0x32   :  { %p1081_p9 = pnand %p1080_p8, %p1074_p5 }
  0x34   :  { %1084 = shalt.err (!%p1081_p9)
}
  0x35   :  { %s1118_s1 = smov 192   ;;  %s1119_s10 = smov 12  }
  0x36   :  { %58 = dma.hbm_to_vmem [thread:$0]  %s1439_s5, 3072, %s53_s11, [#allocation7], %s1118_s1, %s1118_s1, %s1119_s10  }
  0x37   :  { %s1120_s21 = smov [#allocation9]   ;;  %s1085_s25 = scalar_lea.hbm %s1440_s6, 48 }
  0x38   :  { %s65_s22 = sshll.u32 %s1120_s21, 4  ;;  %p1086_p10 = scmp.ne.s32.totalorder %s1440_s6, %s1085_s25  ;;  %s66_s22 = int_to_ptr.vmem [resolvable:$true] %s65_s22 }
  0x39   :  { %p1089_p11 = scmp.lt.u32.totalorder %s1085_s25, %s1440_s6 }
  0x3b   :  { %p1091_p12 = pnand %p1089_p11, %p1086_p10 }
  0x3d   :  { %1094 = shalt.err (!%p1091_p12)
}
  0x3e   :  { %s1095_s29 = scalar_lea.vmem %s66_s22, 48  ;;  %s1099_s5 = scalar_lea.vmem %s66_s22, 64 }
  0x3f   :  { %p1096_p13 = scmp.ne.s32.totalorder %s66_s22, %s1095_s29  ;;  %p1100_p0 = scmp.lt.s32.totalorder %s66_s22, %s66_s22 }
  0x40   :  { %p1101_p1 = scmp.lt.s32.totalorder %s1099_s5, %s1095_s29 }
  0x42   :  { %p1102_p2 = por %p1101_p1, %p1100_p0 }
  0x44   :  { %p1103_p3 = pnand %p1102_p2, %p1096_p13 }
  0x46   :  { %1106 = shalt.err (!%p1103_p3)
}
  0x47   :  { %68 = dma.hbm_to_vmem [thread:$0]  %s1440_s6, 48, %s66_s22, [#allocation10]  }
  0x48   :  { %1107 = dma.done.wait [#allocation5], 256  }
  0x49   :  { %1108 = vsyncadd [#allocation5], 4294967040 }
  0x4a   :  { %1109 = dma.done.wait [#allocation7], 3200  }
  0x4b   :  { %1110 = vsyncadd [#allocation7], 4294964096 }
  0x4c   :  { %1111 = dma.done.wait [#allocation10], 48  }
  0x4d   :  { %1112 = vsyncadd [#allocation10], 4294967248  ;;  %v1121_v1 = vmov 0   ;;  %v977_v2 = vld [vmem:[#allocation4] sm:$0xff]   ;;  %v978_v3 = vld [vmem:[#allocation4 + $0x8] sm:$0xff]   ;;  %vm130_vm0 = vcmask 261120  }
  0x4e   :  { %976 = vset.pattern.permute.xlu0 %v1121_v1  ;;  %816 = vmatprep.mubr.bf16.mxu1 %v1121_v1  ;;  %v86_v4 = vld [vmem:[%s1434_s0] sm:$0xff]   ;;  %v88_v5 = vld [vmem:[%s1434_s0 + $0x8] sm:$0xff]   ;;  %v90_v6 = vld [vmem:[%s1434_s0 + $0x10] sm:$0xff]   ;;  %vm567_vm1 = vcmask 1041409   ;;  %vm569_vm2 = vcmask 1042434   ;;  %vm571_vm3 = vcmask 1043459  }
  0x4f   :  { %929 = vmatprep.subr.bf16.mxu0 %v977_v2  ;;  %v463_v7 = vld [vmem:[%s1437_s3] sm:$0xff]  ;;  %933 = vmatprep.mubr.msk.bf16.mxu0 %vm130_vm0, %v86_v4  ;;  %v92_v9 = vld [vmem:[%s1434_s0 + $0x18] sm:$0xff]   ;;  %v455_v10 = vunpack.c.l.bf16 %v86_v4  ;;  %v456_v11 = vunpack.c.h.bf16 %v86_v4  ;;  %v457_v12 = vunpack.c.l.bf16 %v88_v5  ;;  %v458_v13 = vunpack.c.h.bf16 %v88_v5  ;;  %s1122_s0 = smov 80   ;;  %s1123_s3 = smov 104  }
  0x50   :  { %930 = vmatpush3.bf16.msra.mxu0 %v977_v2  ;;  %v889_v8 = vld [vmem:[#allocation3] ss:$0 sm:$0xff]  ;;  %466 = vperm.xlu0 %976, %v463_v7   ;;  %v459_v14 = vunpack.c.l.bf16 %v90_v6  ;;  %v460_v15 = vunpack.c.h.bf16 %v90_v6  ;;  %v461_v16 = vunpack.c.l.bf16 %v92_v9  ;;  %v462_v17 = vunpack.c.h.bf16 %v92_v9  ;;  %s1124_s1 = smov 56   ;;  %s1126_s10 = smov 24  }
  0x51   :  { %931 = vmatprep.subr.bf16.mxu0 %v978_v3  ;;  %vm573_vm4 = vcmask 1044484   ;;  %vm575_vm5 = vcmask 1045509   ;;  %vm577_vm6 = vcmask 1046534   ;;  %vm579_vm7 = vcmask 1047559  }
  0x52   :  { %vm1127_vm11 = vmmov 0   ;;  %vm398_vm12 = vcmask 195584   ;;  %vm601_vm13 = vcmask 457728  }
  0x54   :  { %932 = vmatpush3.bf16.msra.mxu0 %v978_v3  ;;  %540 = vperm.xlu0 %976, %v889_v8  }
  0x57   :  { %934 = vmatmul.mubr.msk.bf16.vlgmr.msra.gmra.mrb[0].mxu0 %vm130_vm0, %v88_v5 }
  0x58   :  { %937 = vmatprep.mubr.msk.bf16.mxu0 %vm130_vm0, %v90_v6 }
  0x5f   :  { %938 = vmatmul.mubr.msk.bf16.gmra.mrb[4].mxu0 %vm130_vm0, %v92_v9 }
  0xcf   :  { %v467_v18 = vpop.permute.xlu0 %466 }
  0xd0   :  { %v469_v19 = vmul.f32 %v467_v18, %v455_v10  ;;  %v470_v20 = vmul.f32 %v467_v18, %v456_v11  ;;  %v471_v21 = vmul.f32 %v467_v18, %v457_v12  ;;  %v472_v22 = vmul.f32 %v467_v18, %v458_v13 }
  0xd1   :  { %v473_v23 = vmul.f32 %v467_v18, %v459_v14  ;;  %v474_v24 = vmul.f32 %v467_v18, %v460_v15  ;;  %v475_v25 = vmul.f32 %v467_v18, %v461_v16  ;;  %v476_v26 = vmul.f32 %v467_v18, %v462_v17 }
  0xd2   :  { %v477_v27 = vsel %vm130_vm0, %v469_v19, 0.0  ;;  %v484_v28 = vsel %vm130_vm0, %v470_v20, 0.0  ;;  %v491_v29 = vsel %vm130_vm0, %v471_v21, 0.0  ;;  %v498_v30 = vsel %vm130_vm0, %v472_v22, 0.0 }
  0xd3   :  { %v478_v31 = vrot.slane %v477_v27, 4  ;;  %v485_v32 = vrot.slane %v484_v28, 4  ;;  %v492_v33 = vrot.slane %v491_v29, 4  ;;  %v499_v34 = vrot.slane %v498_v30, 4  ;;  %v541_v3 = vpop.permute.xlu0 %540 }
  0xd4   :  { %v505_v35 = vsel %vm130_vm0, %v473_v23, 0.0  ;;  %v512_v36 = vsel %vm130_vm0, %v474_v24, 0.0  ;;  %v519_v37 = vsel %vm130_vm0, %v475_v25, 0.0  ;;  %v526_v38 = vsel %vm130_vm0, %v476_v26, 0.0 }
  0xd5   :  { %v479_v39 = vadd.f32 %v478_v31, %v477_v27  ;;  %v486_v40 = vadd.f32 %v485_v32, %v484_v28  ;;  %v493_v41 = vadd.f32 %v492_v33, %v491_v29  ;;  %v500_v42 = vadd.f32 %v499_v34, %v498_v30 }
  0xd6   :  { %v506_v43 = vrot.slane %v505_v35, 4  ;;  %v513_v44 = vrot.slane %v512_v36, 4  ;;  %v520_v45 = vrot.slane %v519_v37, 4  ;;  %v527_v46 = vrot.slane %v526_v38, 4 }
  0xd7   :  { %v480_v47 = vrot.slane %v479_v39, 2  ;;  %v487_v48 = vrot.slane %v486_v40, 2  ;;  %v494_v49 = vrot.slane %v493_v41, 2  ;;  %v501_v50 = vrot.slane %v500_v42, 2 }
  0xd8   :  { %v507_v51 = vadd.f32 %v506_v43, %v505_v35  ;;  %v514_v52 = vadd.f32 %v513_v44, %v512_v36  ;;  %v521_v53 = vadd.f32 %v520_v45, %v519_v37  ;;  %v528_v54 = vadd.f32 %v527_v46, %v526_v38 }
  0xd9   :  { %v481_v55 = vadd.f32 %v480_v47, %v479_v39  ;;  %v488_v56 = vadd.f32 %v487_v48, %v486_v40  ;;  %v495_v57 = vadd.f32 %v494_v49, %v493_v41  ;;  %v502_v58 = vadd.f32 %v501_v50, %v500_v42 }
  0xda   :  { %v508_v59 = vrot.slane %v507_v51, 2  ;;  %v515_v60 = vrot.slane %v514_v52, 2  ;;  %v522_v61 = vrot.slane %v521_v53, 2  ;;  %v529_v62 = vrot.slane %v528_v54, 2 }
  0xdb   :  { %v482_v63 = vrot.slane %v481_v55, 1  ;;  %v489_v0 = vrot.slane %v488_v56, 1  ;;  %v496_v1 = vrot.slane %v495_v57, 1  ;;  %v503_v2 = vrot.slane %v502_v58, 1 }
  0xdc   :  { %v509_v4 = vadd.f32 %v508_v59, %v507_v51  ;;  %v516_v5 = vadd.f32 %v515_v60, %v514_v52  ;;  %v523_v6 = vadd.f32 %v522_v61, %v521_v53  ;;  %v530_v7 = vadd.f32 %v529_v62, %v528_v54 }
  0xdd   :  { %v483_v8 = vadd.f32 %v482_v63, %v481_v55  ;;  %v490_v9 = vadd.f32 %v489_v0, %v488_v56  ;;  %v497_v10 = vadd.f32 %v496_v1, %v495_v57  ;;  %v504_v11 = vadd.f32 %v503_v2, %v502_v58 }
  0xde   :  { %v510_v12 = vrot.slane %v509_v4, 1  ;;  %v517_v13 = vrot.slane %v516_v5, 1  ;;  %v524_v14 = vrot.slane %v523_v6, 1  ;;  %v531_v15 = vrot.slane %v530_v7, 1 }
  0xdf   :  { %v543_v16 = vadd.f32 %v541_v3, %v483_v8  ;;  %v544_v17 = vadd.f32 %v541_v3, %v490_v9  ;;  %v545_v18 = vadd.f32 %v541_v3, %v497_v10  ;;  %v546_v19 = vadd.f32 %v541_v3, %v504_v11 }
  0xe0   :  { %v511_v20 = vadd.f32 %v510_v12, %v509_v4  ;;  %v518_v21 = vadd.f32 %v517_v13, %v516_v5  ;;  %v525_v22 = vadd.f32 %v524_v14, %v523_v6  ;;  %v532_v23 = vadd.f32 %v531_v15, %v530_v7 }
  0xe1   :  { %v551_v24 = vmax.f32 %v543_v16, 0.0  ;;  %v552_v25 = vmax.f32 %v544_v17, 0.0  ;;  %v553_v29 = vmax.f32 %v545_v18, 0.0  ;;  %v554_v31 = vmax.f32 %v546_v19, 0.0 }
  0xe2   :  { %v547_v26 = vadd.f32 %v541_v3, %v511_v20  ;;  %v548_v27 = vadd.f32 %v541_v3, %v518_v21  ;;  %v549_v28 = vadd.f32 %v541_v3, %v525_v22  ;;  %v550_v30 = vadd.f32 %v541_v3, %v532_v23 }
  0xe3   :  { %v590_v34 = vsel %vm567_vm1, %v552_v25, %v551_v24  ;;  %v216_v43 = vlaneseq }
  0xe4   :  { %v555_v32 = vmax.f32 %v547_v26, 0.0  ;;  %v556_v33 = vmax.f32 %v548_v27, 0.0  ;;  %v557_v35 = vmax.f32 %v549_v28, 0.0  ;;  %v591_v36 = vsel %vm569_vm2, %v553_v29, %v590_v34 }
  0xe5   :  { %v558_v37 = vmax.f32 %v550_v30, 0.0  ;;  %v592_v38 = vsel %vm571_vm3, %v554_v31, %v591_v36  ;;  %v1267_v44 = vshrl.u32 %v216_v43, 7  ;;  %v989_v43 = vld [vmem:[#allocation8 + $0x18] ss:$12 sps:$4 sm:$0xff]  }
  0xe6   :  { %v593_v39 = vsel %vm573_vm4, %v555_v32, %v592_v38  ;;  %v985_v38 = vld [vmem:[#allocation8] ss:$12 sps:$4 sm:$0xff]  }
  0xe7   :  { %v594_v40 = vsel %vm575_vm5, %v556_v33, %v593_v39  ;;  %vm275_vm8 = vcmp.lt.s32.totalorder %v1267_v44, 6  ;;  %vm218_vm9 = vcmp.lt.s32.totalorder %v1267_v44, 7  ;;  %vm332_vm10 = vcmp.lt.s32.totalorder %v1267_v44, 5  ;;  %v986_v39 = vld [vmem:[#allocation8 + $0x8] ss:$12 sps:$4 sm:$0xff]  }
  0xe8   :  { %v595_v41 = vsel %vm577_vm6, %v557_v35, %v594_v40  ;;  %v1125_v40 = vmov 0.0  }
  0xe9   :  { %v1265_v42 = vsel %vm579_vm7, %v558_v37, %v595_v41  ;;  %v983_v37 = vld [vmem:[#allocation8 + $0x4] ss:$12 sps:$4 sm:$0xff]   ;;  %941 = vmatprep.subr.bf16.mxu0 %v1125_v40  ;;  %v987_v41 = vld [vmem:[#allocation8 + $0x1c] ss:$12 sps:$4 sm:$0xff]   ;;  %957 = vmatprep.mubr.msk.bf16.mxu0 %vm1127_vm11, %v1125_v40 }
  0xea   :  { %784 = vmatprep.subr.bf16.mxu1 %v983_v37  ;;  %942 = vmatpush3.bf16.msra.mxu0 %v986_v39 }
  0xeb   :  { %785 = vmatpush1.bf16.msra.mxu1 %v985_v38  ;;  %943 = vmatprep.subr.bf16.mxu0 %v1125_v40 }
  0xec   :  { %786 = vmatprep.subr.bf16.mxu1 %v987_v41 }
  0xef   :  { %787 = vmatpush1.bf16.msra.mxu1 %v989_v43 }
 0x12a   :  { %v1269_v45 = vpop.f32.mrb[0].mxu0 }
 0x12b   :  { %v1271_v46 = vpop.f32.mrb[1].mxu0  ;;  %v210_v47 = vrot.slane %v1269_v45, 1  ;;  %v326_v48 = vrot.slane %v1269_v45, 3  ;;  %v269_v50 = vrot.slane %v1269_v45, 2 }
 0x12c   :  { %v1277_v49 = vpop.f32.mrb[2].mxu0  ;;  %v208_v51 = vrot.slane %v1271_v46, 1  ;;  %v267_v56 = vrot.slane %v1271_v46, 2  ;;  %v324_v60 = vrot.slane %v1271_v46, 3 }
 0x12d   :  { %v211_v52 = vrot.slane %v1277_v49, 1  ;;  %v327_v53 = vrot.slane %v1277_v49, 3  ;;  %v1284_v54 = vpop.f32.mrb[3].mxu0  ;;  %v270_v55 = vrot.slane %v1277_v49, 2 }
 0x12e   :  { %v209_v57 = vrot.slane %v1284_v54, 1  ;;  %v268_v58 = vrot.slane %v1284_v54, 2  ;;  %v325_v59 = vrot.slane %v1284_v54, 3 }
 0x12f   :  { %v280_v61 = vsel %vm275_vm8, %v269_v50, %v270_v55  ;;  %v223_v62 = vsel %vm218_vm9, %v210_v47, %v211_v52  ;;  %v337_v63 = vsel %vm332_vm10, %v326_v48, %v327_v53 }
 0x130   :  { %296 = vrot.lane.b32.xlu1 %v280_v61, %s1122_s0  ;;  %239 = vrot.lane.b32.xlu0 %v223_v62, %s1123_s3  ;;  %v225_v0 = vsel %vm218_vm9, %v208_v51, %v209_v57  ;;  %v282_v1 = vsel %vm275_vm8, %v267_v56, %v268_v58  ;;  %v224_v2 = vsel %vm218_vm9, %v209_v57, %v210_v47  ;;  %v990_v47 = vld [vmem:[#allocation8 + $0x20] ss:$12 sps:$4 sm:$0xff]   ;;  %v1009_v62 = vld [vmem:[#allocation8 + $0x90] ss:$12 sps:$4 sm:$0xff]  }
 0x131   :  { %v339_v3 = vsel %vm332_vm10, %v324_v60, %v325_v59  ;;  %v281_v4 = vsel %vm275_vm8, %v268_v58, %v269_v50  ;;  %v338_v5 = vsel %vm332_vm10, %v325_v59, %v326_v48  ;;  %944 = vmatpush3.bf16.msra.mxu0 %v990_v47  ;;  %v991_v48 = vld [vmem:[#allocation8 + $0x34] ss:$12 sps:$4 sm:$0xff]   ;;  %v993_v50 = vld [vmem:[#allocation8 + $0x30] ss:$12 sps:$4 sm:$0xff]   ;;  %v1005_v59 = vld [vmem:[#allocation8 + $0x78] ss:$12 sps:$4 sm:$0xff]  }
 0x132   :  { %v1312_v6 = vpop.f32.mrb[4].mxu0  ;;  %945 = vmatprep.subr.bf16.mxu0 %v1125_v40  ;;  %788 = vmatprep.subr.bf16.mxu1 %v991_v48  ;;  %v1001_v57 = vld [vmem:[#allocation8 + $0x60] ss:$12 sps:$4 sm:$0xff]   ;;  %v1003_v58 = vld [vmem:[#allocation8 + $0x7c] ss:$12 sps:$4 sm:$0xff]  }
 0x133   :  { %v214_v7 = vrot.slane %v1312_v6, 1  ;;  %v273_v8 = vrot.slane %v1312_v6, 2  ;;  %v1316_v9 = vpop.f32.mrb[5].mxu0  ;;  %v330_v14 = vrot.slane %v1312_v6, 3  ;;  %789 = vmatpush1.bf16.msra.mxu1 %v993_v50  ;;  %v1007_v61 = vld [vmem:[#allocation8 + $0x94] ss:$12 sps:$4 sm:$0xff]  }
 0x134   :  { %v212_v10 = vrot.slane %v1316_v9, 1  ;;  %v271_v11 = vrot.slane %v1316_v9, 2  ;;  %v328_v12 = vrot.slane %v1316_v9, 3  ;;  %353 = vrot.lane.b32.xlu0 %v337_v63, %s1124_s1  ;;  %235 = vrot.lane.b32.xlu1 %v225_v0, %s1123_s3  ;;  %v1323_v13 = vpop.f32.mrb[6].mxu0  ;;  %v1010_v63 = vld [vmem:[#allocation8 + $0x98] ss:$12 sps:$4 sm:$0xff]  }
 0x135   :  { %v215_v15 = vrot.slane %v1323_v13, 1  ;;  %v274_v16 = vrot.slane %v1323_v13, 2  ;;  %v331_v17 = vrot.slane %v1323_v13, 3  ;;  %v1329_v18 = vpop.f32.mrb[7].mxu0  ;;  %v1011_v0 = vld [vmem:[#allocation8 + $0xac] ss:$12 sps:$4 sm:$0xff]  }
 0x136   :  { %v213_v19 = vrot.slane %v1329_v18, 1  ;;  %v272_v20 = vrot.slane %v1329_v18, 2  ;;  %v329_v21 = vrot.slane %v1329_v18, 3  ;;  %v222_v22 = vsel %vm218_vm9, %v211_v52, %v212_v10  ;;  %v995_v52 = vld [vmem:[#allocation8 + $0x4c] ss:$12 sps:$4 sm:$0xff]  }
 0x137   :  { %v219_v23 = vsel %vm218_vm9, %v214_v7, %v215_v15  ;;  %v276_v24 = vsel %vm275_vm8, %v273_v8, %v274_v16  ;;  %v279_v25 = vsel %vm275_vm8, %v270_v55, %v271_v11  ;;  %v283_v26 = vsel %vm275_vm8, %v274_v16, %v267_v56  ;;  %v998_v55 = vld [vmem:[#allocation8 + $0x50] ss:$12 sps:$4 sm:$0xff]   ;;  %790 = vmatprep.subr.bf16.mxu1 %v995_v52 }
 0x138   :  { %292 = vrot.lane.b32.xlu0 %v282_v1, %s1122_s0  ;;  %237 = vrot.lane.b32.xlu1 %v224_v2, %s1123_s3  ;;  %v336_v27 = vsel %vm332_vm10, %v327_v53, %v328_v12  ;;  %v221_v28 = vsel %vm218_vm9, %v212_v10, %v213_v19  ;;  %v226_v29 = vsel %vm218_vm9, %v215_v15, %v208_v51  ;;  %v994_v51 = vld [vmem:[#allocation8 + $0x38] ss:$12 sps:$4 sm:$0xff]   ;;  %v997_v53 = vld [vmem:[#allocation8 + $0x48] ss:$12 sps:$4 sm:$0xff]   ;;  %v1014_v2 = vld [vmem:[#allocation8 + $0xb0] ss:$12 sps:$4 sm:$0xff]  }
 0x139   :  { %v220_v30 = vsel %vm218_vm9, %v213_v19, %v214_v7  ;;  %v278_v31 = vsel %vm275_vm8, %v271_v11, %v272_v20  ;;  %v277_v32 = vsel %vm275_vm8, %v272_v20, %v273_v8  ;;  %v335_v33 = vsel %vm332_vm10, %v328_v12, %v329_v21  ;;  %946 = vmatpush3.bf16.msra.mxu0 %v994_v51  ;;  %v999_v56 = vld [vmem:[#allocation8 + $0x64] ss:$12 sps:$4 sm:$0xff]   ;;  %v1013_v1 = vld [vmem:[#allocation8 + $0xa8] ss:$12 sps:$4 sm:$0xff]   ;;  %v1386_v8 = vld [vmem:[#allocation6] sm:$0xff] }
 0x13a   :  { %v333_v34 = vsel %vm332_vm10, %v330_v14, %v331_v17  ;;  %v334_v35 = vsel %vm332_vm10, %v329_v21, %v330_v14  ;;  %v340_v36 = vsel %vm332_vm10, %v331_v17, %v324_v60  ;;  %947 = vmatprep.subr.bf16.mxu0 %v1125_v40  ;;  %791 = vmatpush1.bf16.msra.mxu1 %v997_v53  ;;  %v1006_v60 = vld [vmem:[#allocation8 + $0x80] ss:$12 sps:$4 sm:$0xff]  }
 0x13b   :  { %792 = vmatprep.subr.bf16.mxu1 %v999_v56 }
 0x13c   :  { %349 = vrot.lane.b32.xlu0 %v339_v3, %s1124_s1  ;;  %294 = vrot.lane.b32.xlu1 %v281_v4, %s1122_s0 }
 0x13d   :  { %948 = vmatpush3.bf16.msra.mxu0 %v998_v55 }
 0x13e   :  { %949 = vmatprep.subr.bf16.mxu0 %v1125_v40  ;;  %793 = vmatpush1.bf16.msra.mxu1 %v1001_v57 }
 0x13f   :  { %794 = vmatprep.subr.bf16.mxu1 %v1003_v58 }
 0x140   :  { %351 = vrot.lane.b32.xlu1 %v338_v5, %s1124_s1  ;;  %247 = vrot.lane.b32.xlu0 %v219_v23, %s1123_s3 }
 0x142   :  { %795 = vmatpush1.bf16.msra.mxu1 %v1005_v59 }
 0x143   :  { %796 = vmatprep.subr.bf16.mxu1 %v1007_v61 }
 0x144   :  { %241 = vrot.lane.b32.xlu1 %v222_v22, %s1123_s3  ;;  %304 = vrot.lane.b32.xlu0 %v276_v24, %s1122_s0 }
 0x146   :  { %797 = vmatpush1.bf16.msra.mxu1 %v1009_v62 }
 0x147   :  { %798 = vmatprep.subr.bf16.mxu1 %v1011_v0 }
 0x148   :  { %298 = vrot.lane.b32.xlu1 %v279_v25, %s1122_s0  ;;  %306 = vrot.lane.b32.xlu0 %v283_v26, %s1122_s0 }
 0x14a   :  { %799 = vmatpush1.bf16.msra.mxu1 %v1013_v1 }
 0x14c   :  { %355 = vrot.lane.b32.xlu1 %v336_v27, %s1124_s1  ;;  %243 = vrot.lane.b32.xlu0 %v221_v28, %s1123_s3 }
 0x150   :  { %249 = vrot.lane.b32.xlu1 %v226_v29, %s1123_s3  ;;  %245 = vrot.lane.b32.xlu0 %v220_v30, %s1123_s3 }
 0x154   :  { %300 = vrot.lane.b32.xlu1 %v278_v31, %s1122_s0  ;;  %302 = vrot.lane.b32.xlu0 %v277_v32, %s1122_s0 }
 0x158   :  { %357 = vrot.lane.b32.xlu1 %v335_v33, %s1124_s1  ;;  %361 = vrot.lane.b32.xlu0 %v333_v34, %s1124_s1 }
 0x15c   :  { %359 = vrot.lane.b32.xlu1 %v334_v35, %s1124_s1  ;;  %597 = vrot.lane.b32.xlu0 %v1265_v42, %s1126_s10  ;;  %v1002_v42 = vld [vmem:[#allocation8 + $0x68] ss:$12 sps:$4 sm:$0xff]  }
 0x15d   :  { %950 = vmatpush3.bf16.msra.mxu0 %v1002_v42 }
 0x15e   :  { %951 = vmatprep.subr.bf16.mxu0 %v1125_v40 }
 0x160   :  { %363 = vrot.lane.b32.xlu1 %v340_v36, %s1124_s1 }
 0x161   :  { %952 = vmatpush3.bf16.msra.mxu0 %v1006_v60 }
 0x162   :  { %953 = vmatprep.subr.bf16.mxu0 %v1125_v40 }
 0x165   :  { %954 = vmatpush3.bf16.msra.mxu0 %v1010_v63 }
 0x166   :  { %955 = vmatprep.subr.bf16.mxu0 %v1125_v40 }
 0x169   :  { %956 = vmatpush3.bf16.msra.mxu0 %v1014_v2 }
 0x1a2   :  { %v297_v3 = vpop.permute.xlu1 %296  ;;  %v240_v4 = vpop.permute.xlu0 %239 }
 0x1a3   :  { %v261_v5 = vadd.f32 %v1269_v45, %v240_v4 }
 0x1a5   :  { %v318_v7 = vadd.f32 %v297_v3, %v261_v5 }
 0x1a6   :  { %v354_v10 = vpop.permute.xlu0 %353  ;;  %v236_v11 = vpop.permute.xlu1 %235 }
 0x1a7   :  { %v375_v12 = vadd.f32 %v354_v10, %v318_v7  ;;  %v259_v19 = vadd.f32 %v236_v11, %v1271_v46 }
 0x1a9   :  { %v384_v14 = vadd.f32 %v1386_v8, %v375_v12 }
 0x1aa   :  { %v293_v15 = vpop.permute.xlu0 %292  ;;  %v238_v16 = vpop.permute.xlu1 %237 }
 0x1ab   :  { %v392_v17 = vmax.f32 %v384_v14, 0.0  ;;  %v316_v20 = vadd.f32 %v293_v15, %v259_v19  ;;  %v260_v45 = vadd.f32 %v238_v16, %v1284_v54 }
 0x1ad   :  { %v413_v21 = vsel %vm398_vm12, %v392_v17, -inf }
 0x1ae   :  { %v350_v22 = vpop.permute.xlu0 %349  ;;  %v295_v23 = vpop.permute.xlu1 %294  ;;  %v414_v25 = vrot.slane %v413_v21, 4 }
 0x1af   :  { %v373_v24 = vadd.f32 %v350_v22, %v316_v20  ;;  %v317_v27 = vadd.f32 %v295_v23, %v260_v45 }
 0x1b0   :  { %v415_v32 = vmax.f32 %v413_v21, %v414_v25 }
 0x1b1   :  { %v382_v26 = vadd.f32 %v1386_v8, %v373_v24 }
 0x1b2   :  { %v352_v28 = vpop.permute.xlu1 %351  ;;  %v248_v29 = vpop.permute.xlu0 %247  ;;  %v416_v54 = vrot.slane %v415_v32, 2 }
 0x1b3   :  { %v390_v30 = vmax.f32 %v382_v26, 0.0  ;;  %v374_v31 = vadd.f32 %v352_v28, %v317_v27  ;;  %v265_v12 = vadd.f32 %v1312_v6, %v248_v29 }
 0x1b4   :  { %v417_v52 = vmax.f32 %v415_v32, %v416_v54 }
 0x1b5   :  { %v399_v33 = vsel %vm398_vm12, %v390_v30, -inf  ;;  %v383_v46 = vadd.f32 %v1386_v8, %v374_v31 }
 0x1b6   :  { %v400_v34 = vrot.slane %v399_v33, 4  ;;  %v242_v35 = vpop.permute.xlu1 %241  ;;  %v305_v36 = vpop.permute.xlu0 %304  ;;  %v418_v60 = vrot.slane %v417_v52, 1 }
 0x1b7   :  { %v391_v37 = vmax.f32 %v383_v46, 0.0  ;;  %v262_v48 = vadd.f32 %v1277_v49, %v242_v35  ;;  %v322_v17 = vadd.f32 %v305_v36, %v265_v12 }
 0x1b8   :  { %v401_v38 = vmax.f32 %v399_v33, %v400_v34  ;;  %v419_v49 = vmax.f32 %v417_v52, %v418_v60 }
 0x1b9   :  { %v406_v39 = vsel %vm398_vm12, %v391_v37, -inf }
 0x1ba   :  { %v402_v40 = vrot.slane %v401_v38, 2  ;;  %v407_v41 = vrot.slane %v406_v39, 4  ;;  %v299_v43 = vpop.permute.xlu1 %298  ;;  %v307_v47 = vpop.permute.xlu0 %306 }
 0x1bb   :  { %v319_v53 = vadd.f32 %v299_v43, %v262_v48 }
 0x1bc   :  { %v403_v50 = vmax.f32 %v401_v38, %v402_v40  ;;  %v408_v51 = vmax.f32 %v406_v39, %v407_v41 }
 0x1be   :  { %v409_v55 = vrot.slane %v408_v51, 2  ;;  %v356_v56 = vpop.permute.xlu1 %355  ;;  %v244_v57 = vpop.permute.xlu0 %243  ;;  %v404_v58 = vrot.slane %v403_v50, 1 }
 0x1bf   :  { %v376_v42 = vadd.f32 %v356_v56, %v319_v53  ;;  %v263_v15 = vadd.f32 %v244_v57, %v1316_v9 }
 0x1c0   :  { %v410_v59 = vmax.f32 %v408_v51, %v409_v55  ;;  %v405_v2 = vmax.f32 %v403_v50, %v404_v58 }
 0x1c1   :  { %v385_v61 = vadd.f32 %v1386_v8, %v376_v42 }
 0x1c2   :  { %v411_v62 = vrot.slane %v410_v59, 1  ;;  %v250_v63 = vpop.permute.xlu1 %249  ;;  %v246_v0 = vpop.permute.xlu0 %245 }
 0x1c3   :  { %v393_v1 = vmax.f32 %v385_v61, 0.0  ;;  %v264_v23 = vadd.f32 %v246_v0, %v1329_v18  ;;  %v266_v26 = vadd.f32 %v1323_v13, %v250_v63 }
 0x1c4   :  { %v412_v3 = vmax.f32 %v410_v59, %v411_v62 }
 0x1c5   :  { %v420_v4 = vsel %vm398_vm12, %v393_v1, -inf  ;;  %v323_v35 = vadd.f32 %v307_v47, %v266_v26 }
 0x1c6   :  { %v568_v5 = vsel %vm567_vm1, %v412_v3, %v405_v2  ;;  %v421_v7 = vrot.slane %v420_v4, 4  ;;  %v301_v10 = vpop.permute.xlu1 %300  ;;  %v303_v11 = vpop.permute.xlu0 %302 }
 0x1c7   :  { %v570_v14 = vsel %vm569_vm2, %v419_v49, %v568_v5  ;;  %v320_v19 = vadd.f32 %v301_v10, %v263_v15  ;;  %v321_v27 = vadd.f32 %v303_v11, %v264_v23 }
 0x1c8   :  { %v422_v16 = vmax.f32 %v420_v4, %v421_v7 }
 0x1ca   :  { %v423_v20 = vrot.slane %v422_v16, 2  ;;  %v358_v21 = vpop.permute.xlu1 %357  ;;  %v362_v22 = vpop.permute.xlu0 %361 }
 0x1cb   :  { %v377_v45 = vadd.f32 %v358_v21, %v320_v19  ;;  %v379_v24 = vadd.f32 %v362_v22, %v322_v17  ;;  %v643_v19 = vsub.s32 0, %v1267_v44  ;;  %v639_v21 = vld [vmem:[#allocation9] sm:$0x7]  ;;  %v647_v22 = vsub.s32 1, %v1267_v44 }
 0x1cc   :  { %v424_v25 = vmax.f32 %v422_v16, %v423_v20  ;;  %v651_v20 = vsub.s32 2, %v1267_v44 }
 0x1cd   :  { %v386_v6 = vadd.f32 %v1386_v8, %v377_v45  ;;  %v388_v28 = vadd.f32 %v1386_v8, %v379_v24  ;;  %v644_v23 = vrot.slane %v639_v21, %v643_v19  ;;  %v648_v24 = vrot.slane %v639_v21, %v647_v22 }
 0x1ce   :  { %v425_v29 = vrot.slane %v424_v25, 1  ;;  %v360_v9 = vpop.permute.xlu1 %359  ;;  %v598_v11 = vpop.permute.xlu0 %597  ;;  %v652_v45 = vrot.slane %v639_v21, %v651_v20 }
 0x1cf   :  { %v394_v30 = vmax.f32 %v386_v6, 0.0  ;;  %v396_v31 = vmax.f32 %v388_v28, 0.0  ;;  %v378_v32 = vadd.f32 %v360_v9, %v321_v27 }
 0x1d0   :  { %v426_v33 = vmax.f32 %v424_v25, %v425_v29 }
 0x1d1   :  { %v427_v46 = vsel %vm398_vm12, %v394_v30, -inf  ;;  %v441_v18 = vsel %vm398_vm12, %v396_v31, -inf  ;;  %v387_v34 = vadd.f32 %v1386_v8, %v378_v32 }
 0x1d2   :  { %v572_v13 = vsel %vm571_vm3, %v426_v33, %v570_v14  ;;  %v428_v36 = vrot.slane %v427_v46, 4  ;;  %v442_v37 = vrot.slane %v441_v18, 4  ;;  %v364_v38 = vpop.permute.xlu1 %363 }
 0x1d3   :  { %v395_v54 = vmax.f32 %v387_v34, 0.0  ;;  %v380_v39 = vadd.f32 %v364_v38, %v323_v35 }
 0x1d4   :  { %v429_v40 = vmax.f32 %v427_v46, %v428_v36  ;;  %v443_v41 = vmax.f32 %v441_v18, %v442_v37 }
 0x1d5   :  { %v434_v43 = vsel %vm398_vm12, %v395_v54, -inf  ;;  %v389_v48 = vadd.f32 %v1386_v8, %v380_v39 }
 0x1d6   :  { %v430_v50 = vrot.slane %v429_v40, 2  ;;  %v444_v51 = vrot.slane %v443_v41, 2  ;;  %v435_v52 = vrot.slane %v434_v43, 4 }
 0x1d7   :  { %v397_v53 = vmax.f32 %v389_v48, 0.0 }
 0x1d8   :  { %v431_v55 = vmax.f32 %v429_v40, %v430_v50  ;;  %v436_v56 = vmax.f32 %v434_v43, %v435_v52  ;;  %v445_v47 = vmax.f32 %v443_v41, %v444_v51 }
 0x1d9   :  { %v448_v57 = vsel %vm398_vm12, %v397_v53, -inf }
 0x1da   :  { %v432_v42 = vrot.slane %v431_v55, 1  ;;  %v437_v58 = vrot.slane %v436_v56, 2  ;;  %v449_v59 = vrot.slane %v448_v57, 4  ;;  %v446_v63 = vrot.slane %v445_v47, 1 }
 0x1dc   :  { %v433_v60 = vmax.f32 %v431_v55, %v432_v42  ;;  %v438_v61 = vmax.f32 %v436_v56, %v437_v58  ;;  %v450_v62 = vmax.f32 %v448_v57, %v449_v59  ;;  %v447_v49 = vmax.f32 %v445_v47, %v446_v63 }
 0x1de   :  { %v574_v0 = vsel %vm573_vm4, %v433_v60, %v572_v13  ;;  %v439_v1 = vrot.slane %v438_v61, 1  ;;  %v451_v8 = vrot.slane %v450_v62, 2 }
 0x1e0   :  { %v440_v2 = vmax.f32 %v438_v61, %v439_v1  ;;  %v452_v3 = vmax.f32 %v450_v62, %v451_v8 }
 0x1e2   :  { %v576_v4 = vsel %vm575_vm5, %v440_v2, %v574_v0  ;;  %v453_v5 = vrot.slane %v452_v3, 1 }
 0x1e3   :  { %v578_v7 = vsel %vm577_vm6, %v447_v49, %v576_v4 }
 0x1e4   :  { %v454_v10 = vmax.f32 %v452_v3, %v453_v5 }
 0x1e6   :  { %v580_v12 = vsel %vm579_vm7, %v454_v10, %v578_v7 }
 0x1e7   :  { %v600_v14 = vsel %vm398_vm12, %v580_v12, %v598_v11 }
 0x1e8   :  { %v602_v15 = vsel %vm601_vm13, %v600_v14, 0.0 }
 0x1e9   :  { %603 = vst [vmem:[%s1442_s8] sm:$0xff] %v602_v15  ;;  %v604_v16 = vpack.c.bf16 %v602_v15, %v602_v15 }
 0x1eb   :  { %605 = vst [vmem:[#allocation2] sm:$0xf] %v604_v16 }
 0x1f2   :  { %v606_v17 = vld [vmem:[#allocation2] sm:$0xf] }
 0x1f3   :  { %817 = vmatmul.mubr.bf16.vlgmr.msra.gmra.mrb[0].mxu1 %v606_v17  ;;  %958 = vmatmul.mubr.bf16.vlgmr.msra.gmra.mrb[8].mxu0 %v606_v17 }
 0x2c6   :  { %v818_v25 = vpop.f32.mrb[0].mxu1  ;;  %v859_v26 = vpop.f32.mrb[8].mxu0 }
 0x2c7   :  { %v819_v27 = vadd.f32 %v818_v25, %v644_v23  ;;  %v860_v6 = vadd.f32 %v859_v26, %v652_v45  ;;  %v820_v28 = vpop.f32.mrb[1].mxu1  ;;  %v959_v29 = vpop.f32.mrb[9].mxu0 }
 0x2c8   :  { %v821_v9 = vadd.f32 %v820_v28, %v648_v24  ;;  %v822_v30 = vpop.f32.mrb[2].mxu1  ;;  %v862_v31 = vpop.f32.mrb[10].mxu0 }
 0x2c9   :  { %865 = vst [vmem:[%s1441_s7] sm:$0xff] %v819_v27  ;;  %867 = vst [vmem:[%s1441_s7 + $0x10] sm:$0xff] %v860_v6  ;;  %v823_v44 = vpop.f32.mrb[3].mxu1  ;;  %v960_v32 = vpop.f32.mrb[11].mxu0 }
 0x2ca   :  { %866 = vst [vmem:[%s1441_s7 + $0x8] sm:$0xff] %v821_v9 }
 0x2cb   :  { %876 = vsyncpa [#allocation5], 1 }
 0x2cc   :  { %877 = vsyncpa [#allocation7], 1 }
 0x2cd   :  { %878 = vsyncpa [#allocation10], 1 }

</bundles_post_ra>
